<compile_context>
chip_gen: v6e
topology: v6e:2x2x1
jax: 0.10.0
libtpu: 0.0.40
codegen_flags: <defaults>
</compile_context>

<pallas_src>
from functools import partial

import jax
import jax.numpy as jnp
from jax.experimental import pallas as pl
from jax.experimental.pallas import tpu as pltpu

LANE = 128


def bpnn_kernel(x_ref, w1t_ref, b1_ref, w2t_ref, b2_ref, o_ref, *, compute_dtype):
    # Batch-on-sublane layout:
    #   x_ref  : (tile_b, in_dim)
    #   w1t_ref: (in_dim, hidden)    = fc1.weight.T
    #   b1_ref : (1, hidden)
    #   w2t_ref: (hidden, out_dim)   = fc2.weight.T
    #   b2_ref : (1, out_dim)
    #   o_ref  : (tile_b, out_dim)
    x = x_ref[...].astype(compute_dtype)
    w1t = w1t_ref[...].astype(compute_dtype)

    h = jnp.dot(x, w1t, preferred_element_type=jnp.float32)      # (tile_b, hidden), f32 acc
    h = jnp.maximum(h + b1_ref[...], 0.0)                        # bias + ReLU on VPU (f32)

    w2t = w2t_ref[...].astype(compute_dtype)
    y = jnp.dot(h.astype(compute_dtype), w2t,
                preferred_element_type=jnp.float32)              # (tile_b, out_dim)
    o_ref[...] = (y + b2_ref[...]).astype(o_ref.dtype)


def _choose_tile_b(B, *, target_steps=4, max_tile=8192, align=LANE):
    """Single block for small batches; otherwise ~target_steps 128-aligned tiles."""
    if B <= 2 * align:
        # One block whose shape equals the full array dims (always legal per the
        # (8,128) rule) -> one grid step, zero padding, no forced split.
        return B
    tile = pl.cdiv(B, target_steps)
    tile = pl.cdiv(tile, align) * align
    return max(align, min(tile, max_tile))


def bpnn_forward(x, w1, b1, w2, b2, *, tile_b=None, compute_dtype=jnp.float32):
    """x: (B, in_dim); w1: (hidden, in_dim); b1: (hidden,); w2: (out, hidden); b2: (out,).

    Weights/biases are expected in PyTorch nn.Linear layout; the tiny transposes
    below are negligible compared to the x stream.
    """
    B, in_dim = x.shape
    hidden = w1.shape[0]
    out_dim = w2.shape[0]

    if tile_b is None:
        tile_b = _choose_tile_b(B)
    grid = (pl.cdiv(B, tile_b),)   # last block may be partial; Pallas pads/masks it

    w1t = w1.T                       # (in_dim, hidden)  -- 8x64, trivial
    w2t = w2.T                       # (hidden, out_dim) -- 64x1, trivial
    b1r = b1.reshape(1, hidden)
    b2r = b2.reshape(1, out_dim)

    return pl.pallas_call(
        partial(bpnn_kernel, compute_dtype=compute_dtype),
        out_shape=jax.ShapeDtypeStruct((B, out_dim), x.dtype),
        grid_spec=pltpu.PrefetchScalarGridSpec(
            num_scalar_prefetch=0,
            grid=grid,
            in_specs=[
                # activations: tiled along the batch (sublane) axis, read in place
                pl.BlockSpec((tile_b, in_dim), lambda i: (i, 0)),
                # weights / biases: constant index_map -> VMEM-resident across steps
                pl.BlockSpec((in_dim, hidden), lambda i: (0, 0)),
                pl.BlockSpec((1, hidden), lambda i: (0, 0)),
                pl.BlockSpec((hidden, out_dim), lambda i: (0, 0)),
                pl.BlockSpec((1, out_dim), lambda i: (0, 0)),
            ],
            out_specs=pl.BlockSpec((tile_b, out_dim), lambda i: (i, 0)),
        ),
        compiler_params=pltpu.CompilerParams(
            dimension_semantics=("parallel",)),
    )(x, w1t, b1r, w2t, b2r)


def init_params(key, input_size=8, hidden_size=64, output_size=1):
    """Deterministic init mimicking PyTorch nn.Linear defaults, in PyTorch layout."""
    k1, k2, k3, k4 = jax.random.split(key, 4)
    bound1 = 1.0 / jnp.sqrt(jnp.float32(input_size))
    bound2 = 1.0 / jnp.sqrt(jnp.float32(hidden_size))
    w1 = jax.random.uniform(k1, (hidden_size, input_size), jnp.float32, -bound1, bound1)
    b1 = jax.random.uniform(k2, (hidden_size,), jnp.float32, -bound1, bound1)
    w2 = jax.random.uniform(k3, (output_size, hidden_size), jnp.float32, -bound2, bound2)
    b2 = jax.random.uniform(k4, (output_size,), jnp.float32, -bound2, bound2)
    return w1, b1, w2, b2


def reference_forward(x, w1, b1, w2, b2):
    h = jnp.maximum(x @ w1.T + b1, 0.0)
    return h @ w2.T + b2


if __name__ == "__main__":
    key = jax.random.PRNGKey(0)
    kx, kp, kx2 = jax.random.split(key, 3)

    batch, input_size, hidden_size, output_size = 16, 8, 64, 1
    x = jax.random.normal(kx, (batch, input_size), jnp.float32)
    w1, b1, w2, b2 = init_params(kp, input_size, hidden_size, output_size)

    # Small batch: single grid step, block shape equals full array dims.
    out = bpnn_forward(x, w1, b1, w2, b2)
    out = jax.block_until_ready(out)
    ref = reference_forward(x, w1, b1, w2, b2)
    assert out.shape == (batch, output_size)
    assert jnp.allclose(out, ref, atol=1e-5, rtol=1e-5), "mismatch vs reference (small)"

    # Multi-step grid with a partial edge block (300 rows, tile 128 -> 3 steps),
    # exercising the no-padding, batch-on-sublane path.
    batch2 = 300
    x2 = jax.random.normal(kx2, (batch2, input_size), jnp.float32)
    out2 = bpnn_forward(x2, w1, b1, w2, b2, tile_b=128)
    out2 = jax.block_until_ready(out2)
    ref2 = reference_forward(x2, w1, b1, w2, b2)
    assert out2.shape == (batch2, output_size)
    assert jnp.allclose(out2, ref2, atol=1e-5, rtol=1e-5), "mismatch vs reference (tiled)"

    print("KERNEL_OK")
</pallas_src>

<mosaic_0001>
module attributes {stable_mosaic.version = 11 : i64} {
  func.func @bpnn_kernel(%arg0: i32, %arg1: memref<16x8xf32, #tpu.memory_space<vmem>>, %arg2: memref<8x64xf32, #tpu.memory_space<vmem>>, %arg3: memref<1x64xf32, #tpu.memory_space<vmem>>, %arg4: memref<64x1xf32, #tpu.memory_space<vmem>>, %arg5: memref<1x1xf32, #tpu.memory_space<vmem>>, %arg6: memref<16x1xf32, #tpu.memory_space<vmem>>) attributes {dimension_semantics = [#tpu.dimension_semantics<parallel>], iteration_bounds = array<i64: 1>, scalar_prefetch = 0 : i64, scratch_operands = 0 : i64, tpu.core_type = #tpu.core_type<tc>, window_params = [{transform_indices = @transform_0, window_bounds = array<i64: 16, 8>}, {pipeline_mode = #tpu.pipeline_mode<synchronous>, transform_indices = @transform_1, window_bounds = array<i64: 8, 64>}, {pipeline_mode = #tpu.pipeline_mode<synchronous>, transform_indices = @transform_2, window_bounds = array<i64: 1, 64>}, {pipeline_mode = #tpu.pipeline_mode<synchronous>, transform_indices = @transform_3, window_bounds = array<i64: 64, 1>}, {pipeline_mode = #tpu.pipeline_mode<synchronous>, transform_indices = @transform_4, window_bounds = array<i64: 1, 1>}, {transform_indices = @transform_5, window_bounds = array<i64: 16, 1>}]} {
    %c0 = arith.constant 0 : index
    %c0_0 = arith.constant 0 : index
    %0 = vector.load %arg1[%c0, %c0_0] : memref<16x8xf32, #tpu.memory_space<vmem>>, vector<16x8xf32>
    %c0_1 = arith.constant 0 : index
    %c0_2 = arith.constant 0 : index
    %1 = vector.load %arg2[%c0_1, %c0_2] : memref<8x64xf32, #tpu.memory_space<vmem>>, vector<8x64xf32>
    %cst = arith.constant dense<0.000000e+00> : vector<16x64xf32>
    %2 = tpu.matmul %0, %1, %cst {dimension_numbers = #tpu.dot_dimension_numbers<[1], [0], [0], [1], [0, 0, 1, 1], [], []>} : vector<16x8xf32>, vector<8x64xf32>, vector<16x64xf32> -> vector<16x64xf32>
    %c0_3 = arith.constant 0 : index
    %c0_4 = arith.constant 0 : index
    %3 = vector.load %arg3[%c0_3, %c0_4] : memref<1x64xf32, #tpu.memory_space<vmem>>, vector<1x64xf32>
    %4 = vector.broadcast %3 : vector<1x64xf32> to vector<16x64xf32>
    %5 = arith.addf %2, %4 : vector<16x64xf32>
    %cst_5 = arith.constant 0.000000e+00 : f32
    %6 = vector.broadcast %cst_5 : f32 to vector<16x64xf32>
    %7 = arith.maximumf %5, %6 : vector<16x64xf32>
    %c0_6 = arith.constant 0 : index
    %c0_7 = arith.constant 0 : index
    %8 = vector.load %arg4[%c0_6, %c0_7] : memref<64x1xf32, #tpu.memory_space<vmem>>, vector<64x1xf32>
    %cst_8 = arith.constant dense<0.000000e+00> : vector<16x1xf32>
    %9 = tpu.matmul %7, %8, %cst_8 {dimension_numbers = #tpu.dot_dimension_numbers<[1], [0], [0], [1], [0, 0, 1, 1], [], []>} : vector<16x64xf32>, vector<64x1xf32>, vector<16x1xf32> -> vector<16x1xf32>
    %c0_9 = arith.constant 0 : index
    %c0_10 = arith.constant 0 : index
    %10 = vector.load %arg5[%c0_9, %c0_10] : memref<1x1xf32, #tpu.memory_space<vmem>>, vector<1x1xf32>
    %11 = vector.broadcast %10 : vector<1x1xf32> to vector<16x1xf32>
    %12 = arith.addf %9, %11 : vector<16x1xf32>
    %c0_11 = arith.constant 0 : index
    %c0_12 = arith.constant 0 : index
    %13 = vector.load %arg6[%c0_11, %c0_12] : memref<16x1xf32, #tpu.memory_space<vmem>>, vector<16x1xf32>
    tpu.vector_store %arg6[%c0_11, %c0_12], %12 {strides = array<i32>} : memref<16x1xf32, #tpu.memory_space<vmem>>, vector<16x1xf32>,
    return
  }
  func.func @transform_0(%arg0: i32) -> (i32, i32) {
    %c0_i32 = arith.constant 0 : i32
    %c0_i32_0 = arith.constant 0 : i32
    return %arg0, %c0_i32 : i32, i32
  }
  func.func @transform_1(%arg0: i32) -> (i32, i32) {
    %c0_i32 = arith.constant 0 : i32
    %c0_i32_0 = arith.constant 0 : i32
    %c0_i32_1 = arith.constant 0 : i32
    return %c0_i32, %c0_i32_0 : i32, i32
  }
  func.func @transform_2(%arg0: i32) -> (i32, i32) {
    %c0_i32 = arith.constant 0 : i32
    %c0_i32_0 = arith.constant 0 : i32
    %c0_i32_1 = arith.constant 0 : i32
    return %c0_i32, %c0_i32_0 : i32, i32
  }
  func.func @transform_3(%arg0: i32) -> (i32, i32) {
    %c0_i32 = arith.constant 0 : i32
    %c0_i32_0 = arith.constant 0 : i32
    %c0_i32_1 = arith.constant 0 : i32
    return %c0_i32, %c0_i32_0 : i32, i32
  }
  func.func @transform_4(%arg0: i32) -> (i32, i32) {
    %c0_i32 = arith.constant 0 : i32
    %c0_i32_0 = arith.constant 0 : i32
    %c0_i32_1 = arith.constant 0 : i32
    return %c0_i32, %c0_i32_0 : i32, i32
  }
  func.func @transform_5(%arg0: i32) -> (i32, i32) {
    %c0_i32 = arith.constant 0 : i32
    %c0_i32_0 = arith.constant 0 : i32
    return %arg0, %c0_i32 : i32, i32
  }
}

</mosaic_0001>

<bundles_post_ra>
// kernel: tpu_custom_call.1
= control target key start
LH: loop header
LB: loop body
LE: loop exit
PB: predicated region body
PF: predicated region fallthrough
CT: control target
= control target key end

     0   :  { %vm32_vm0 = vcmask 64512   ;;  %vm131_vm1 = vcmask 523264   ;;  %vm213_vm2 = vcmask 7168   ;;  %s338_s1 = inlined_call_operand.vmem [shape: f32[8,64], index: 1, kind: input, shape index: {}]   ;;  %s339_s0 = inlined_call_operand.vmem [shape: f32[16,8], index: 0, kind: input, shape index: {}]   ;;  %s340_s3 = inlined_call_operand.vmem [shape: f32[64,1], index: 3, kind: input, shape index: {}]   ;;  %s341_s4 = inlined_call_operand.<no memory space> [shape: f32[1,1], index: 4, kind: input, shape index: {}]   ;;  %s342_s2 = inlined_call_operand.vmem [shape: f32[1,64], index: 2, kind: input, shape index: {}]   ;;  %s343_s5 = inlined_call_operand.vmem [shape: f32[16,1], index: 5, kind: output, shape index: {}]  }
   0x1   :  { %v24_v0 = vld [vmem:[%s338_s1] sm:$0xff]  ;;  %v23_v2 = vld [vmem:[%s339_s0 + $0x8] sm:$0xff]  ;;  %v123_v3 = vld [vmem:[%s340_s3 + $0x38] sm:$0xff]  ;;  %v10_v11 = vstv %s341_s4 }
   0x2   :  { %v22_v1 = vld [vmem:[%s339_s0] sm:$0xff]  ;;  %239 = vmatprep.subr.mxu0 %v24_v0  ;;  %v122_v4 = vld [vmem:[%s340_s3 + $0x30] sm:$0xff]  ;;  %244 = vmatprep.subr.mxu1 %v123_v3  ;;  %v121_v5 = vld [vmem:[%s340_s3 + $0x28] sm:$0xff]  ;;  %11 = vst [vmem:[#allocation2] sm:$0x1] %v10_v11 }
   0x3   :  { %241 = vmatprep.mubr.msk.f32.mxu0 %vm32_vm0, %v22_v1  ;;  %240 = vmatpush3.msra.mxu0 %v24_v0  ;;  %v120_v6 = vld [vmem:[%s340_s3 + $0x20] sm:$0xff]  ;;  %v119_v7 = vld [vmem:[%s340_s3 + $0x18] sm:$0xff]  ;;  %v118_v8 = vld [vmem:[%s340_s3 + $0x10] sm:$0xff] }
   0x4   :  { %242 = vmatmul.mubr.msk.f32.vlgmr.msra.gmra.mxu0 %vm32_vm0, %v23_v2  ;;  %245 = vmatpush3.msra.mxu1 %v123_v3  ;;  %v117_v9 = vld [vmem:[%s340_s3 + $0x8] sm:$0xff]  ;;  %v116_v10 = vld [vmem:[%s340_s3] sm:$0xff] }
   0x5   :  { %246 = vmatprep.subr.mxu1 %v122_v4  ;;  %v220_v12 = vld [vmem:[%s342_s2] ss:$0 sm:$0xff] }
   0x6   :  { %247 = vmatpush3.msra.mxu1 %v122_v4 }
   0x7   :  { %248 = vmatprep.subr.mxu1 %v121_v5 }
   0x8   :  { %249 = vmatpush3.msra.mxu1 %v121_v5 }
   0x9   :  { %250 = vmatprep.subr.mxu1 %v120_v6  ;;  %v223_v19 = vld [vmem:[#allocation2] ss:$0 sm:$0xff] }
   0xa   :  { %251 = vmatpush3.msra.mxu1 %v120_v6 }
   0xb   :  { %252 = vmatprep.subr.mxu1 %v119_v7 }
   0xc   :  { %253 = vmatpush3.msra.mxu1 %v119_v7 }
   0xd   :  { %254 = vmatprep.subr.mxu1 %v118_v8 }
   0xe   :  { %255 = vmatpush3.msra.mxu1 %v118_v8 }
   0xf   :  { %256 = vmatprep.subr.mxu1 %v117_v9 }
  0x10   :  { %257 = vmatpush3.msra.mxu1 %v117_v9 }
  0x11   :  { %258 = vmatprep.subr.mxu1 %v116_v10 }
  0x12   :  { %259 = vmatpush3.msra.mxu1 %v116_v10 }
  0xc4   :  { %v243_v13 = vpop.f32.mrf.mxu0 }
  0xc5   :  { %v111_v14 = vadd.f32 %v243_v13, %v220_v12 }
  0xc6   :  { %v105_v15 = vpop.f32.mrf.mxu0 }
  0xc7   :  { %v106_v16 = vadd.f32 %v220_v12, %v105_v15  ;;  %v115_v18 = vmax.f32 %v111_v14, 0.0 }
  0xc9   :  { %v114_v17 = vmax.f32 %v106_v16, 0.0 }
  0xcb   :  { %260 = vmatprep.mubr.msk.f32.mxu1 %vm131_vm1, %v114_v17 }
  0xcc   :  { %261 = vmatmul.mubr.msk.f32.vlgmr.msra.gmra.mxu1 %vm131_vm1, %v115_v18 }
 0x18c   :  { %v262_v20 = vpop.f32.mrf.mxu1 }
 0x18d   :  { %v210_v21 = vadd.f32 %v262_v20, %v223_v19 }
 0x18e   :  { %v204_v22 = vpop.f32.mrf.mxu1 }
 0x18f   :  { %215 = vst.msk [vmem:[%s343_s5 + $0x8] sm:$0xff] %vm213_vm2, %v210_v21  ;;  %v205_v23 = vadd.f32 %v223_v19, %v204_v22 }
 0x191   :  { %214 = vst.msk [vmem:[%s343_s5] sm:$0xff] %vm213_vm2, %v205_v23 }

</bundles_post_ra>
